<compile_context>
chip_gen: v6e
topology: v6e:2x2x1
jax: 0.10.0
libtpu: 0.0.40
codegen_flags: <defaults>
</compile_context>

<pallas_src>
import jax
import jax.numpy as jnp
from jax.experimental import pallas as pl
from jax.experimental.pallas import tpu as pltpu

LN_EPS = 1e-5  # PyTorch nn.LayerNorm default


def actor_kernel(s_ref, w1_ref, b1_ref, g_ref, beta_ref, w2_ref, b2_ref, out_ref):
    # fc1: f32 operands, f32 accumulation on the MXU; then bias + ReLU.
    h = jnp.dot(s_ref[...], w1_ref[...], preferred_element_type=jnp.float32)
    h = jnp.maximum(h + b1_ref[...], 0.0)                 # [Bt, H] + [1, H]

    # One-pass LayerNorm over the last axis (biased variance, like torch.nn.LayerNorm).
    # mean and E[x^2] are independent reductions; var = E[x^2] - mean^2.
    inv_h = 1.0 / h.shape[-1]
    mean = jnp.sum(h, axis=-1, keepdims=True) * inv_h
    ex2 = jnp.sum(h * h, axis=-1, keepdims=True) * inv_h
    var = jnp.maximum(ex2 - mean * mean, 0.0)             # guard tiny negative rounding
    xn = (h - mean) * jax.lax.rsqrt(var + LN_EPS)         # rsqrt -> EUP slot
    xn = xn * g_ref[...] + beta_ref[...]

    # fc2: f32 operands, f32 accumulation; then bias.
    logits = jnp.dot(xn, w2_ref[...], preferred_element_type=jnp.float32)
    logits = logits + b2_ref[...]                         # [Bt, A] + [1, A]

    # Numerically stable softmax over the action axis.
    m = jnp.max(logits, axis=-1, keepdims=True)
    e = jnp.exp(logits - m)
    denom = jnp.sum(e, axis=-1, keepdims=True)
    # approx=False keeps the tight sum-to-1 / allclose tolerances.
    out_ref[...] = (e * pl.reciprocal(denom, approx=False)).astype(out_ref.dtype)


def _round_up(x, m):
    return ((x + m - 1) // m) * m


def _pick_block_b(B):
    """Adaptive batch-tile size.

    Small batches: a single tile rounded up to a sublane multiple of 8 (no
    wasteful pad to 128). Large batches: tiles capped at 512 rows, and at least
    2 tiles so the "parallel" batch axis keeps both v7x TensorCores busy.
    """
    B8 = _round_up(max(B, 8), 8)
    if B8 <= 256:
        return B8
    n_tiles = max(2, pl.cdiv(B8, 512))
    return _round_up(pl.cdiv(B8, n_tiles), 8)


def actor_forward(s, w1, b1, gamma, beta, w2, b2, *, block_b=None):
    """Batched forward pass. Pads batch to a multiple of `block_b` and tiles it."""
    B, S = s.shape
    H = w1.shape[1]
    A = w2.shape[1]

    if block_b is None:
        block_b = _pick_block_b(B)
    n_tiles = pl.cdiv(B, block_b)
    B_pad = n_tiles * block_b
    if B_pad != B:
        s = jnp.pad(s, ((0, B_pad - B), (0, 0)))

    # Parameters: full extent, constant block index -> resident in VMEM across all
    # grid steps (fetched once per call). Buffered(1): no useless double-buffering.
    def resident(shape):
        return pl.BlockSpec(shape, lambda i: (0,) * len(shape),
                            pipeline_mode=pl.Buffered(1))

    param_bytes = sum(int(p.size) * p.dtype.itemsize
                      for p in (w1, b1, gamma, beta, w2, b2))
    cost = pl.CostEstimate(
        flops=2 * B_pad * (S * H + H * A),
        transcendentals=B_pad * (A + 2),               # exp per action + rsqrt + recip
        bytes_accessed=int(s.size) * s.dtype.itemsize + param_bytes + B_pad * A * 4,
    )

    out = pl.pallas_call(
        actor_kernel,
        out_shape=jax.ShapeDtypeStruct((B_pad, A), jnp.float32),
        grid=(n_tiles,),
        in_specs=[
            pl.BlockSpec((block_b, S), lambda i: (i, 0)),   # activations: pipelined
            resident(w1.shape),
            resident(b1.shape),
            resident(gamma.shape),
            resident(beta.shape),
            resident(w2.shape),
            resident(b2.shape),
        ],
        out_specs=pl.BlockSpec((block_b, A), lambda i: (i, 0)),
        compiler_params=pltpu.CompilerParams(
            dimension_semantics=("parallel",)),             # batch tiles independent
        cost_estimate=cost,
    )(s, w1, b1, gamma, beta, w2, b2)

    return out[:B]
    # TODO(synk): if this Actor sits in a tight RL loop with fixed weights, a
    # cross-call weight-residency pattern (P10: start the weight DMA in a prior
    # call and hand the semaphore/VMEM ref forward) would hide the per-call
    # parameter fetch entirely.


def init_params(key, state_dim, hidden_dim, action_dim):
    # Deterministic init mimicking PyTorch nn.Linear's uniform(-1/sqrt(fan_in), ...).
    # Everything stays f32 to match PyTorch Linear / LayerNorm numerics.
    k1, k2, k3, k4 = jax.random.split(key, 4)
    bound1 = 1.0 / jnp.sqrt(state_dim)
    bound2 = 1.0 / jnp.sqrt(hidden_dim)
    w1 = jax.random.uniform(k1, (state_dim, hidden_dim), jnp.float32, -bound1, bound1)
    b1 = jax.random.uniform(k2, (1, hidden_dim), jnp.float32, -bound1, bound1)
    w2 = jax.random.uniform(k3, (hidden_dim, action_dim), jnp.float32, -bound2, bound2)
    b2 = jax.random.uniform(k4, (1, action_dim), jnp.float32, -bound2, bound2)
    gamma = jnp.ones((1, hidden_dim), jnp.float32)   # LayerNorm weight init
    beta = jnp.zeros((1, hidden_dim), jnp.float32)   # LayerNorm bias init
    return w1, b1, gamma, beta, w2, b2


def reference_forward(s, w1, b1, gamma, beta, w2, b2):
    # Pure-JAX f32 reference mirroring PyTorch Actor.forward semantics
    # (true f32 matmuls, two-pass LayerNorm statistics).
    hp = jax.lax.Precision.HIGHEST
    h = jnp.dot(s, w1, precision=hp) + b1
    h = jnp.maximum(h, 0.0)
    mean = jnp.mean(h, axis=-1, keepdims=True)
    var = jnp.mean((h - mean) ** 2, axis=-1, keepdims=True)
    xn = (h - mean) * jax.lax.rsqrt(var + LN_EPS) * gamma + beta
    logits = jnp.dot(xn, w2, precision=hp) + b2
    return jax.nn.softmax(logits, axis=-1)


if __name__ == "__main__":
    state_dim, hidden_dim, action_dim = 32, 300, 6   # hidden_dim fixed by the module

    key = jax.random.PRNGKey(0)
    k_s1, k_s2, k_p = jax.random.split(key, 3)
    params = init_params(k_p, state_dim, hidden_dim, action_dim)

    # Comparison tolerance: covers f32 matmul-precision pathway differences
    # between Mosaic (in-kernel) and XLA (reference) plus the one-pass vs
    # two-pass LayerNorm variance; probabilities agree to well under 1e-3.
    TOL = 1e-3

    # Small RL-style batch: single (8, 32) tile, no 128-row padding waste.
    s_small = jax.random.normal(k_s1, (8, state_dim), jnp.float32)
    out_small = jax.block_until_ready(actor_forward(s_small, *params))
    ref_small = reference_forward(s_small, *params)
    assert out_small.shape == (8, action_dim)
    assert jnp.allclose(jnp.sum(out_small, axis=-1), 1.0, atol=1e-5)
    assert jnp.allclose(out_small, ref_small, atol=TOL, rtol=TOL)

    # Larger batch exercising the multi-tile pipelined path (2 parallel tiles of 192).
    s_big = jax.random.normal(k_s2, (384, state_dim), jnp.float32)
    out_big = jax.block_until_ready(actor_forward(s_big, *params))
    ref_big = reference_forward(s_big, *params)
    assert out_big.shape == (384, action_dim)
    assert jnp.allclose(jnp.sum(out_big, axis=-1), 1.0, atol=1e-5)
    assert jnp.allclose(out_big, ref_big, atol=TOL, rtol=TOL)

    print("KERNEL_OK")
</pallas_src>

<mosaic_0001>
module attributes {stable_mosaic.version = 11 : i64} {
  func.func @actor_kernel(%arg0: i32, %arg1: memref<8x32xf32, #tpu.memory_space<vmem>>, %arg2: memref<32x300xf32, #tpu.memory_space<vmem>>, %arg3: memref<1x300xf32, #tpu.memory_space<vmem>>, %arg4: memref<1x300xf32, #tpu.memory_space<vmem>>, %arg5: memref<1x300xf32, #tpu.memory_space<vmem>>, %arg6: memref<300x6xf32, #tpu.memory_space<vmem>>, %arg7: memref<1x6xf32, #tpu.memory_space<vmem>>, %arg8: memref<8x6xf32, #tpu.memory_space<vmem>>) attributes {dimension_semantics = [#tpu.dimension_semantics<parallel>], iteration_bounds = array<i64: 1>, scalar_prefetch = 0 : i64, scratch_operands = 0 : i64, tpu.core_type = #tpu.core_type<tc>, window_params = [{transform_indices = @transform_0, window_bounds = array<i64: 8, 32>}, {pipeline_mode = #tpu.pipeline_mode<synchronous>, transform_indices = @transform_1, window_bounds = array<i64: 32, 300>}, {pipeline_mode = #tpu.pipeline_mode<synchronous>, transform_indices = @transform_2, window_bounds = array<i64: 1, 300>}, {pipeline_mode = #tpu.pipeline_mode<synchronous>, transform_indices = @transform_3, window_bounds = array<i64: 1, 300>}, {pipeline_mode = #tpu.pipeline_mode<synchronous>, transform_indices = @transform_4, window_bounds = array<i64: 1, 300>}, {pipeline_mode = #tpu.pipeline_mode<synchronous>, transform_indices = @transform_5, window_bounds = array<i64: 300, 6>}, {pipeline_mode = #tpu.pipeline_mode<synchronous>, transform_indices = @transform_6, window_bounds = array<i64: 1, 6>}, {transform_indices = @transform_7, window_bounds = array<i64: 8, 6>}]} {
    %c0 = arith.constant 0 : index
    %c0_0 = arith.constant 0 : index
    %0 = vector.load %arg1[%c0, %c0_0] : memref<8x32xf32, #tpu.memory_space<vmem>>, vector<8x32xf32>
    %c0_1 = arith.constant 0 : index
    %c0_2 = arith.constant 0 : index
    %1 = vector.load %arg2[%c0_1, %c0_2] : memref<32x300xf32, #tpu.memory_space<vmem>>, vector<32x300xf32>
    %cst = arith.constant dense<0.000000e+00> : vector<8x300xf32>
    %2 = tpu.matmul %0, %1, %cst {dimension_numbers = #tpu.dot_dimension_numbers<[1], [0], [0], [1], [0, 0, 1, 1], [], []>} : vector<8x32xf32>, vector<32x300xf32>, vector<8x300xf32> -> vector<8x300xf32>
    %c0_3 = arith.constant 0 : index
    %c0_4 = arith.constant 0 : index
    %3 = vector.load %arg3[%c0_3, %c0_4] : memref<1x300xf32, #tpu.memory_space<vmem>>, vector<1x300xf32>
    %4 = vector.broadcast %3 : vector<1x300xf32> to vector<8x300xf32>
    %5 = arith.addf %2, %4 : vector<8x300xf32>
    %cst_5 = arith.constant 0.000000e+00 : f32
    %6 = vector.broadcast %cst_5 : f32 to vector<8x300xf32>
    %7 = arith.maximumf %5, %6 : vector<8x300xf32>
    %cst_6 = arith.constant dense<0.000000e+00> : vector<8xf32>
    %8 = vector.multi_reduction <add>, %7, %cst_6 [1] : vector<8x300xf32> to vector<8xf32>
    %9 = vector.shape_cast %8 : vector<8xf32> to vector<8x1xf32>
    %cst_7 = arith.constant 0.00333333341 : f32
    %10 = vector.broadcast %cst_7 : f32 to vector<8x1xf32>
    %11 = arith.mulf %9, %10 : vector<8x1xf32>
    %12 = arith.mulf %7, %7 : vector<8x300xf32>
    %cst_8 = arith.constant dense<0.000000e+00> : vector<8xf32>
    %13 = vector.multi_reduction <add>, %12, %cst_8 [1] : vector<8x300xf32> to vector<8xf32>
    %14 = vector.shape_cast %13 : vector<8xf32> to vector<8x1xf32>
    %cst_9 = arith.constant 0.00333333341 : f32
    %15 = vector.broadcast %cst_9 : f32 to vector<8x1xf32>
    %16 = arith.mulf %14, %15 : vector<8x1xf32>
    %17 = arith.mulf %11, %11 : vector<8x1xf32>
    %18 = arith.subf %16, %17 : vector<8x1xf32>
    %cst_10 = arith.constant 0.000000e+00 : f32
    %19 = vector.broadcast %cst_10 : f32 to vector<8x1xf32>
    %20 = arith.maximumf %18, %19 : vector<8x1xf32>
    %21 = vector.broadcast %11 : vector<8x1xf32> to vector<8x300xf32>
    %22 = arith.subf %7, %21 : vector<8x300xf32>
    %cst_11 = arith.constant 9.99999974E-6 : f32
    %23 = vector.broadcast %cst_11 : f32 to vector<8x1xf32>
    %24 = arith.addf %20, %23 : vector<8x1xf32>
    %25 = math.rsqrt %24 : vector<8x1xf32>
    %26 = vector.broadcast %25 : vector<8x1xf32> to vector<8x300xf32>
    %27 = arith.mulf %22, %26 : vector<8x300xf32>
    %c0_12 = arith.constant 0 : index
    %c0_13 = arith.constant 0 : index
    %28 = vector.load %arg4[%c0_12, %c0_13] : memref<1x300xf32, #tpu.memory_space<vmem>>, vector<1x300xf32>
    %29 = vector.broadcast %28 : vector<1x300xf32> to vector<8x300xf32>
    %30 = arith.mulf %27, %29 : vector<8x300xf32>
    %c0_14 = arith.constant 0 : index
    %c0_15 = arith.constant 0 : index
    %31 = vector.load %arg5[%c0_14, %c0_15] : memref<1x300xf32, #tpu.memory_space<vmem>>, vector<1x300xf32>
    %32 = vector.broadcast %31 : vector<1x300xf32> to vector<8x300xf32>
    %33 = arith.addf %30, %32 : vector<8x300xf32>
    %c0_16 = arith.constant 0 : index
    %c0_17 = arith.constant 0 : index
    %34 = vector.load %arg6[%c0_16, %c0_17] : memref<300x6xf32, #tpu.memory_space<vmem>>, vector<300x6xf32>
    %cst_18 = arith.constant dense<0.000000e+00> : vector<8x6xf32>
    %35 = tpu.matmul %33, %34, %cst_18 {dimension_numbers = #tpu.dot_dimension_numbers<[1], [0], [0], [1], [0, 0, 1, 1], [], []>} : vector<8x300xf32>, vector<300x6xf32>, vector<8x6xf32> -> vector<8x6xf32>
    %c0_19 = arith.constant 0 : index
    %c0_20 = arith.constant 0 : index
    %36 = vector.load %arg7[%c0_19, %c0_20] : memref<1x6xf32, #tpu.memory_space<vmem>>, vector<1x6xf32>
    %37 = vector.broadcast %36 : vector<1x6xf32> to vector<8x6xf32>
    %38 = arith.addf %35, %37 : vector<8x6xf32>
    %cst_21 = arith.constant dense<0xFF800000> : vector<8xf32>
    %39 = vector.multi_reduction <maximumf>, %38, %cst_21 [1] : vector<8x6xf32> to vector<8xf32>
    %40 = vector.shape_cast %39 : vector<8xf32> to vector<8x1xf32>
    %41 = vector.broadcast %40 : vector<8x1xf32> to vector<8x6xf32>
    %42 = arith.subf %38, %41 : vector<8x6xf32>
    %43 = math.exp %42 : vector<8x6xf32>
    %cst_22 = arith.constant dense<0.000000e+00> : vector<8xf32>
    %44 = vector.multi_reduction <add>, %43, %cst_22 [1] : vector<8x6xf32> to vector<8xf32>
    %45 = vector.shape_cast %44 : vector<8xf32> to vector<8x1xf32>
    %46 = tpu.reciprocal %45 : vector<8x1xf32> -> vector<8x1xf32>
    %47 = vector.broadcast %46 : vector<8x1xf32> to vector<8x6xf32>
    %48 = arith.mulf %43, %47 : vector<8x6xf32>
    %c0_23 = arith.constant 0 : index
    %c0_24 = arith.constant 0 : index
    %49 = vector.load %arg8[%c0_23, %c0_24] : memref<8x6xf32, #tpu.memory_space<vmem>>, vector<8x6xf32>
    tpu.vector_store %arg8[%c0_23, %c0_24], %48 {strides = array<i32>} : memref<8x6xf32, #tpu.memory_space<vmem>>, vector<8x6xf32>,
    return
  }
  func.func @transform_0(%arg0: i32) -> (i32, i32) {
    %c0_i32 = arith.constant 0 : i32
    %c0_i32_0 = arith.constant 0 : i32
    return %arg0, %c0_i32 : i32, i32
  }
  func.func @transform_1(%arg0: i32) -> (i32, i32) {
    %c0_i32 = arith.constant 0 : i32
    %c0_i32_0 = arith.constant 0 : i32
    %c0_i32_1 = arith.constant 0 : i32
    return %c0_i32, %c0_i32_0 : i32, i32
  }
  func.func @transform_2(%arg0: i32) -> (i32, i32) {
    %c0_i32 = arith.constant 0 : i32
    %c0_i32_0 = arith.constant 0 : i32
    %c0_i32_1 = arith.constant 0 : i32
    return %c0_i32, %c0_i32_0 : i32, i32
  }
  func.func @transform_3(%arg0: i32) -> (i32, i32) {
    %c0_i32 = arith.constant 0 : i32
    %c0_i32_0 = arith.constant 0 : i32
    %c0_i32_1 = arith.constant 0 : i32
    return %c0_i32, %c0_i32_0 : i32, i32
  }
  func.func @transform_4(%arg0: i32) -> (i32, i32) {
    %c0_i32 = arith.constant 0 : i32
    %c0_i32_0 = arith.constant 0 : i32
    %c0_i32_1 = arith.constant 0 : i32
    return %c0_i32, %c0_i32_0 : i32, i32
  }
  func.func @transform_5(%arg0: i32) -> (i32, i32) {
    %c0_i32 = arith.constant 0 : i32
    %c0_i32_0 = arith.constant 0 : i32
    %c0_i32_1 = arith.constant 0 : i32
    return %c0_i32, %c0_i32_0 : i32, i32
  }
  func.func @transform_6(%arg0: i32) -> (i32, i32) {
    %c0_i32 = arith.constant 0 : i32
    %c0_i32_0 = arith.constant 0 : i32
    %c0_i32_1 = arith.constant 0 : i32
    return %c0_i32, %c0_i32_0 : i32, i32
  }
  func.func @transform_7(%arg0: i32) -> (i32, i32) {
    %c0_i32 = arith.constant 0 : i32
    %c0_i32_0 = arith.constant 0 : i32
    return %arg0, %c0_i32 : i32, i32
  }
}

</mosaic_0001>

<bundles_post_ra>
// kernel: tpu_custom_call.1
= control target key start
LH: loop header
LB: loop body
LE: loop exit
PB: predicated region body
PF: predicated region fallthrough
CT: control target
= control target key end

     0   :  { %v600_v4 = vmov 0.0   ;;  %s865_s0 = inlined_call_operand.vmem [shape: f32[8,32], index: 0, kind: input, shape index: {}]   ;;  %s866_s1 = inlined_call_operand.vmem [shape: f32[32,300], index: 1, kind: input, shape index: {}]   ;;  %s867_s2 = inlined_call_operand.vmem [shape: f32[1,300], index: 2, kind: input, shape index: {}]   ;;  %s868_s3 = inlined_call_operand.vmem [shape: f32[1,300], index: 3, kind: input, shape index: {}]   ;;  %s869_s4 = inlined_call_operand.vmem [shape: f32[1,300], index: 4, kind: input, shape index: {}]   ;;  %s870_s5 = inlined_call_operand.vmem [shape: f32[300,6], index: 5, kind: input, shape index: {}]   ;;  %s871_s6 = inlined_call_operand.vmem [shape: f32[1,6], index: 6, kind: input, shape index: {}]   ;;  %s872_s7 = inlined_call_operand.hbm [shape: f32[8,6], index: 7, kind: output, shape index: {}]  }
   0x1   :  { %v38_v0 = vld [vmem:[%s866_s1 + $0x50] sm:$0xff]  ;;  %v37_v1 = vld [vmem:[%s866_s1 + $0x48] sm:$0xff]  ;;  %v35_v2 = vld [vmem:[%s866_s1 + $0x38] sm:$0xff]  ;;  %125 = vmatprep.mubr.f32.mxu1 %v600_v4 }
   0x2   :  { %85 = vmatprep.subr.mxu1 %v38_v0  ;;  %v34_v3 = vld [vmem:[%s866_s1 + $0x30] sm:$0xff]  ;;  %v32_v5 = vld [vmem:[%s866_s1 + $0x20] sm:$0xff]  ;;  %v31_v6 = vld [vmem:[%s866_s1 + $0x18] sm:$0xff] }
   0x3   :  { %86 = vmatpush1.msra.mxu1 %v37_v1  ;;  %v29_v7 = vld [vmem:[%s866_s1 + $0x8] sm:$0xff] }
   0x4   :  { %87 = vmatprep.subr.mxu1 %v35_v2 }
   0x5   :  { %88 = vmatpush1.msra.mxu1 %v34_v3 }
   0x6   :  { %12 = vsyncpa [#allocation3], 0  ;;  %89 = vmatprep.subr.mxu1 %v32_v5  ;;  %v28_v8 = vld [vmem:[%s866_s1] sm:$0xff]  ;;  %vm57_vm0 = vcmask 261120   ;;  %v39_v10 = vld [vmem:[%s866_s1 + $0x58] sm:$0xff]  ;;  %vm601_vm1 = vmmov 0   ;;  %v42_v14 = vlaneseq }
   0x7   :  { %90 = vmatpush1.msra.mxu1 %v31_v6  ;;  %v27_v9 = vld [vmem:[%s865_s0] sm:$0xff]  ;;  %v33_v12 = vld [vmem:[%s866_s1 + $0x28] sm:$0xff]  ;;  %v30_v13 = vld [vmem:[%s866_s1 + $0x10] sm:$0xff]  ;;  %vm206_vm2 = vcmask 359424   ;;  %vm320_vm3 = vcmask 1043456   ;;  %vm464_vm4 = vcmask 48128  }
   0x8   :  { %91 = vmatprep.subr.mxu1 %v29_v7  ;;  %v36_v11 = vld [vmem:[%s866_s1 + $0x40] sm:$0xff]  ;;  %v43_v15 = vshrl.u32 %v42_v14, 7  ;;  %v303_v42 = vld [vmem:[%s870_s5 + $0xf8] sm:$0xff]  ;;  %v302_v44 = vld [vmem:[%s870_s5 + $0xf0] sm:$0xff] }
   0x9   :  { %92 = vmatpush1.msra.mxu1 %v28_v8  ;;  %v40_v18 = vld [vmem:[%s867_s2] sm:$0x7]  ;;  %501 = vmatprep.subr.mxu0 %v303_v42  ;;  %v287_v43 = vld [vmem:[%s870_s5 + $0x78] sm:$0xff]  ;;  %v286_v45 = vld [vmem:[%s870_s5 + $0x70] sm:$0xff] }
   0xa   :  { %491 = vmatmul.mubr.msk.f32.vlgmr.msra.gmra.mxu1 %vm57_vm0, %v27_v9  ;;  %543 = vmatprep.subr.mxu1 %v600_v4  ;;  %v692_v16 = vsub.s32 0, %v43_v15  ;;  %v694_v17 = vsub.s32 1, %v43_v15  ;;  %v701_v22 = vsub.s32 2, %v43_v15  ;;  %v301_v46 = vld [vmem:[%s870_s5 + $0xe8] sm:$0xff]  ;;  %v300_v48 = vld [vmem:[%s870_s5 + $0xe0] sm:$0xff]  ;;  %v299_v50 = vld [vmem:[%s870_s5 + $0xd8] sm:$0xff] }
   0xb   :  { %544 = vmatpush3.msra.mxu1 %v39_v10  ;;  %551 = vmatprep.mubr.msk.f32.mxu1 %vm601_vm1, %v600_v4  ;;  %v285_v47 = vld [vmem:[%s870_s5 + $0x68] sm:$0xff]  ;;  %v284_v49 = vld [vmem:[%s870_s5 + $0x60] sm:$0xff]  ;;  %v283_v51 = vld [vmem:[%s870_s5 + $0x58] sm:$0xff] }
   0xc   :  { %545 = vmatprep.subr.mxu1 %v600_v4  ;;  %v45_v19 = vrot.slane %v40_v18, %v692_v16  ;;  %v49_v21 = vrot.slane %v40_v18, %v694_v17  ;;  %v53_v26 = vrot.slane %v40_v18, %v701_v22  ;;  %502 = vmatpush3.msra.mxu0 %v287_v43  ;;  %v298_v52 = vld [vmem:[%s870_s5 + $0xd0] sm:$0xff]  ;;  %v297_v54 = vld [vmem:[%s870_s5 + $0xc8] sm:$0xff]  ;;  %v296_v56 = vld [vmem:[%s870_s5 + $0xc0] sm:$0xff] }
   0xd   :  { %546 = vmatpush3.msra.mxu1 %v36_v11  ;;  %503 = vmatprep.subr.mxu0 %v302_v44  ;;  %v282_v53 = vld [vmem:[%s870_s5 + $0x50] sm:$0xff]  ;;  %v281_v55 = vld [vmem:[%s870_s5 + $0x48] sm:$0xff]  ;;  %v280_v57 = vld [vmem:[%s870_s5 + $0x40] sm:$0xff] }
   0xe   :  { %547 = vmatprep.subr.mxu1 %v600_v4  ;;  %504 = vmatpush3.msra.mxu0 %v286_v45  ;;  %v295_v58 = vld [vmem:[%s870_s5 + $0xb8] sm:$0xff]  ;;  %v309_v60 = vld [vmem:[%s870_s5 + $0x128] sm:$0xf]  ;;  %v294_v61 = vld [vmem:[%s870_s5 + $0xb0] sm:$0xff] }
   0xf   :  { %548 = vmatpush3.msra.mxu1 %v33_v12  ;;  %505 = vmatprep.subr.mxu0 %v301_v46  ;;  %v279_v59 = vld [vmem:[%s870_s5 + $0x38] sm:$0xff]  ;;  %v308_v62 = vld [vmem:[%s870_s5 + $0x120] sm:$0xff]  ;;  %v278_v63 = vld [vmem:[%s870_s5 + $0x30] sm:$0xff] }
  0x10   :  { %549 = vmatprep.subr.mxu1 %v600_v4  ;;  %506 = vmatpush3.msra.mxu0 %v285_v47  ;;  %v307_v0 = vld [vmem:[%s870_s5 + $0x118] sm:$0xff]  ;;  %v293_v1 = vld [vmem:[%s870_s5 + $0xa8] sm:$0xff]  ;;  %v306_v3 = vld [vmem:[%s870_s5 + $0x110] sm:$0xff] }
  0x11   :  { %550 = vmatpush3.msra.mxu1 %v30_v13  ;;  %507 = vmatprep.subr.mxu0 %v300_v48  ;;  %v277_v2 = vld [vmem:[%s870_s5 + $0x28] sm:$0xff]  ;;  %v292_v5 = vld [vmem:[%s870_s5 + $0xa0] sm:$0xff]  ;;  %v291_v8 = vld [vmem:[%s870_s5 + $0x98] sm:$0xff] }
  0x12   :  { %552 = vmatmul.mubr.msk.f32.vlgmr.msra.gmra.mxu1 %vm57_vm0, %v27_v9  ;;  %554 = vmatprep.subr.mxu1 %v600_v4  ;;  %v276_v6 = vld [vmem:[%s870_s5 + $0x20] sm:$0xff]  ;;  %v305_v7 = vld [vmem:[%s870_s5 + $0x108] sm:$0xff]  ;;  %v275_v9 = vld [vmem:[%s870_s5 + $0x18] sm:$0xff] }
  0x13   :  { %566 = vmatprep.mubr.msk.f32.mxu1 %vm601_vm1, %v600_v4  ;;  %508 = vmatpush3.msra.mxu0 %v284_v49  ;;  %v304_v10 = vld [vmem:[%s870_s5 + $0x100] sm:$0xff]  ;;  %v290_v11 = vld [vmem:[%s870_s5 + $0x90] sm:$0xff]  ;;  %v289_v13 = vld [vmem:[%s870_s5 + $0x88] sm:$0xff] }
  0x14   :  { %509 = vmatprep.subr.mxu0 %v299_v50  ;;  %555 = vmatpush3.msk.msra.mxu1 %vm320_vm3, %v309_v60  ;;  %v274_v12 = vld [vmem:[%s870_s5 + $0x10] sm:$0xff]  ;;  %v273_v14 = vld [vmem:[%s870_s5 + $0x8] sm:$0xff]  ;;  %v288_v15 = vld [vmem:[%s870_s5 + $0x80] sm:$0xff] }
  0x15   :  { %510 = vmatpush3.msra.mxu0 %v283_v51  ;;  %556 = vmatprep.subr.mxu1 %v600_v4 }
  0x16   :  { %511 = vmatprep.subr.mxu0 %v298_v52  ;;  %557 = vmatpush3.msra.mxu1 %v308_v62 }
  0x17   :  { %512 = vmatpush3.msra.mxu0 %v282_v53  ;;  %558 = vmatprep.subr.mxu1 %v600_v4 }
  0x18   :  { %513 = vmatprep.subr.mxu0 %v297_v54  ;;  %559 = vmatpush3.msra.mxu1 %v307_v0 }
  0x19   :  { %514 = vmatpush3.msra.mxu0 %v281_v55  ;;  %560 = vmatprep.subr.mxu1 %v600_v4 }
  0x1a   :  { %515 = vmatprep.subr.mxu0 %v296_v56  ;;  %561 = vmatpush3.msra.mxu1 %v306_v3 }
  0x1b   :  { %516 = vmatpush3.msra.mxu0 %v280_v57  ;;  %562 = vmatprep.subr.mxu1 %v600_v4 }
  0x1c   :  { %517 = vmatprep.subr.mxu0 %v295_v58  ;;  %563 = vmatpush3.msra.mxu1 %v305_v7 }
  0x1d   :  { %518 = vmatpush3.msra.mxu0 %v279_v59  ;;  %564 = vmatprep.subr.mxu1 %v600_v4  ;;  %v272_v4 = vld [vmem:[%s870_s5] sm:$0xff]  ;;  %s602_s5 = smov [#allocation2]  }
  0x1e   :  { %519 = vmatprep.subr.mxu0 %v294_v61  ;;  %565 = vmatpush3.msra.mxu1 %v304_v10 }
  0x1f   :  { %520 = vmatpush3.msra.mxu0 %v278_v63 }
  0x20   :  { %521 = vmatprep.subr.mxu0 %v293_v1 }
  0x21   :  { %522 = vmatpush3.msra.mxu0 %v277_v2 }
  0x22   :  { %523 = vmatprep.subr.mxu0 %v292_v5 }
  0x23   :  { %524 = vmatpush3.msra.mxu0 %v276_v6 }
  0x24   :  { %525 = vmatprep.subr.mxu0 %v291_v8 }
  0x25   :  { %526 = vmatpush3.msra.mxu0 %v275_v9 }
  0x26   :  { %527 = vmatprep.subr.mxu0 %v290_v11 }
  0x27   :  { %528 = vmatpush3.msra.mxu0 %v274_v12 }
  0x28   :  { %529 = vmatprep.subr.mxu0 %v289_v13 }
  0x29   :  { %530 = vmatpush3.msra.mxu0 %v273_v14 }
  0x2a   :  { %531 = vmatprep.subr.mxu0 %v288_v15 }
  0x2b   :  { %532 = vmatpush3.msra.mxu0 %v272_v4 }
  0xca   :  { %v127_v20 = vpop.f32.mrf.mxu1 }
  0xcb   :  { %v128_v24 = vadd.f32 %v127_v20, %v45_v19 }
  0xcc   :  { %v129_v23 = vpop.f32.mrf.mxu1 }
  0xcd   :  { %v130_v25 = vadd.f32 %v129_v23, %v49_v21  ;;  %v704_v27 = vmax.f32 %v128_v24, 0.0 }
  0xcf   :  { %v706_v28 = vmax.f32 %v130_v25, 0.0  ;;  %v212_v34 = vmul.f32 %v704_v27, %v704_v27 }
  0xd1   :  { %v205_v33 = vadd.f32 %v706_v28, %v704_v27  ;;  %v213_v35 = vmul.f32 %v706_v28, %v706_v28 }
  0xd2   :  { %v198_v29 = vpop.f32.mrf.mxu1 }
  0xd3   :  { %v199_v30 = vadd.f32 %v198_v29, %v53_v26  ;;  %v215_v40 = vadd.f32 %v213_v35, %v212_v34  ;;  %v232_v29 = vld [vmem:[%s868_s3] sm:$0x7] }
  0xd4   :  { %v553_v31 = vpop.f32.mrf.mxu1 }
  0xd5   :  { %v708_v32 = vmax.f32 %v199_v30, 0.0  ;;  %v252_v30 = vld [vmem:[%s869_s4] sm:$0x7]  ;;  %v241_v31 = vrot.slane %v232_v29, %v694_v17 }
  0xd6   :  { %v257_v44 = vrot.slane %v252_v30, %v692_v16 }
  0xd7   :  { %v207_v36 = vsel %vm206_vm2, %v708_v32, 0.0  ;;  %v214_v37 = vmul.f32 %v708_v32, %v708_v32 }
  0xd8   :  { %v208_v38 = vadd.f32 %v207_v36, %v205_v33  ;;  %v245_v33 = vrot.slane %v232_v29, %v701_v22 }
  0xd9   :  { %v216_v39 = vsel %vm206_vm2, %v214_v37, 0.0  ;;  %v237_v37 = vrot.slane %v232_v29, %v692_v16 }
  0xda   :  { %209 = vadd.xlane.f32.xlu0 %v208_v38  ;;  %v217_v41 = vadd.f32 %v216_v39, %v215_v40  ;;  %v261_v39 = vrot.slane %v252_v30, %v694_v17  ;;  %v265_v40 = vrot.slane %v252_v30, %v701_v22  ;;  %v493_v22 = vld [vmem:[%s871_s6] ss:$0 sm:$0xff]  ;;  %s483_s6 = sshll.u32 %s602_s5, 4  ;;  %s484_s6 = int_to_ptr.vmem [resolvable:$true] %s483_s6 }
  0xdb   :  { %s578_s28 = scalar_lea.vmem %s484_s6, 128  ;;  %p583_p1 = scmp.lt.s32.totalorder %s484_s6, %s484_s6 }
  0xdc   :  { %p579_p0 = scmp.ne.s32.totalorder %s484_s6, %s578_s28  ;;  %p584_p2 = scmp.lt.s32.totalorder %s578_s28, %s578_s28 }
  0xde   :  { %218 = vadd.xlane.f32.xlu0 %v217_v41  ;;  %p585_p3 = por %p584_p2, %p583_p1 }
  0xe0   :  { %p586_p4 = pnand %p585_p3, %p579_p0 }
 0x163   :  { %v210_v18 = vpop.xlane.xlu0 %209 }
 0x164   :  { %v211_v19 = vmul.f32 0.0033333334, %v210_v18 }
 0x166   :  { %v221_v21 = vmul.f32 %v211_v19, %v211_v19  ;;  %v224_v34 = vsub.f32 %v704_v27, %v211_v19  ;;  %v226_v35 = vsub.f32 %v708_v32, %v211_v19  ;;  %v225_v36 = vsub.f32 %v706_v28, %v211_v19 }
 0x167   :  { %v219_v20 = vpop.xlane.xlu0 %218 }
 0x168   :  { %v220_v23 = vmul.f32 0.0033333334, %v219_v20 }
 0x16a   :  { %v222_v24 = vsub.f32 %v220_v23, %v221_v21 }
 0x16c   :  { %v223_v25 = vmax.f32 %v222_v24, 0.0 }
 0x16e   :  { %v227_v26 = vadd.f32 1e-05, %v223_v25 }
 0x170   :  { %572 = vrsqrt.f32 %v227_v26 }
 0x17d   :  { %v573_v38 = vpop.eup %572 }
 0x17e   :  { %v230_v41 = vmul.f32 %v573_v38, %v225_v36  ;;  %v231_v42 = vmul.f32 %v573_v38, %v226_v35  ;;  %v229_v43 = vmul.f32 %v573_v38, %v224_v34 }
 0x180   :  { %v250_v45 = vmul.f32 %v241_v31, %v230_v41  ;;  %v251_v46 = vmul.f32 %v245_v33, %v231_v42  ;;  %v249_v47 = vmul.f32 %v237_v37, %v229_v43 }
 0x182   :  { %v270_v27 = vadd.f32 %v261_v39, %v250_v45  ;;  %v271_v48 = vadd.f32 %v265_v40, %v251_v46  ;;  %v269_v32 = vadd.f32 %v257_v44, %v249_v47 }
 0x184   :  { %388 = vmatprep.mubr.f32.mxu0 %v270_v27  ;;  %567 = vmatmul.mubr.msk.f32.vlgmr.msra.gmra.mxu1 %vm206_vm2, %v271_v48 }
 0x185   :  { %389 = vmatmul.mubr.f32.vlgmr.msra.gmra.mxu0 %v269_v32 }
 0x244   :  { %v460_v28 = vpop.f32.mrf.mxu1 }
 0x245   :  { %v533_v49 = vpop.f32.mrf.mxu0 }
 0x246   :  { %v568_v17 = vpop.f32.mrf.mxu1 }
 0x247   :  { %v534_v50 = vpop.f32.mrf.mxu0 }
 0x248   :  { %v535_v51 = vadd.f32 %v534_v50, %v533_v49 }
 0x24a   :  { %v391_v16 = vadd.f32 %v535_v51, %v493_v22 }
 0x24c   :  { %v461_v52 = vadd.f32 %v460_v28, %v391_v16 }
 0x24e   :  { %v465_v53 = vsel %vm464_vm4, %v461_v52, -inf }
 0x24f   :  { %466 = vmax.xlane.f32.xlu1 %v465_v53 }
 0x2d8   :  { %v467_v54 = vpop.xlane.xlu1 %466 }
 0x2d9   :  { %v468_v55 = vsub.f32 %v461_v52, %v467_v54 }
 0x2db   :  { %v469_v56 = vmul.f32 1.442695, %v468_v55 }
 0x2dd   :  { %574 = vpow2.f32 %v469_v56 }
 0x2ea   :  { %v575_v57 = vpop.eup %574 }
 0x2eb   :  { %v471_v58 = vsel %vm464_vm4, %v575_v57, 0.0 }
 0x2ec   :  { %472 = vadd.xlane.f32.xlu1 %v471_v58 }
 0x375   :  { %v473_v59 = vpop.xlane.xlu1 %472 }
 0x376   :  { %576 = vrcp.f32 %v473_v59 }
 0x383   :  { %v577_v60 = vpop.eup %576 }
 0x384   :  { %v475_v61 = vmul.f32 %v577_v60, %v575_v57 }
 0x386   :  { %476 = vst.msk [vmem:[#allocation2] sm:$0xff] %vm464_vm4, %v475_v61 }
 0x387   :  { %589 = shalt.err (!%p586_p4)
}
 0x388   :  { %486 = dma.vmem_to_hbm [thread:$0]  %s484_s6, 128, %s872_s7, [#allocation3]  }
 0x389   :  { %598 = dma.done.wait [#allocation3], 128  }
 0x38a   :  { %599 = vsyncadd [#allocation3], 4294967168 }
 0x38b   :  { %490 = vsyncpa [#allocation3], 1 }

</bundles_post_ra>
